<compile_context>
chip_gen: v7x
topology: tpu7x:2x2x1
jax: 0.10.0
libtpu: 0.0.40
codegen_flags: <defaults>
</compile_context>

<pallas_src>
import functools

import jax
import jax.numpy as jnp
from jax.experimental import pallas as pl
from jax.experimental.pallas import tpu as pltpu


# ----------------------------- kernels ------------------------------------ #

def _fused_rmsnorm_kernel(x_ref, scale_ref, o_ref, *, inv_n):
    """Single pass: whole per-batch slabs resident in VMEM.

    x_ref    : (bb, rows, lanes) covering bb full batch elements.
    scale_ref: (rows, lanes); constant block index -> fetched from HBM once.
    o_ref    : (bb, rows, lanes) output.
    """
    x = x_ref[...].astype(jnp.float32)
    xsq = x * x
    ss = jnp.sum(xsq, axis=2, keepdims=True)      # (bb, rows, 1) cross-lane
    ss = jnp.sum(ss, axis=1, keepdims=True)       # (bb, 1, 1)    cross-sublane
    inv_rms = jax.lax.rsqrt(ss * inv_n)           # EUP
    s = scale_ref[...].astype(jnp.float32)
    o_ref[...] = (x * s[None, :, :] * inv_rms).astype(o_ref.dtype)


def _sumsq_kernel(x_ref, inv_rms_ref, acc_ref, *, inv_n, acc_rows):
    """Two-pass path, pass 1: per-batch inv_rms = rsqrt(mean(x^2)).

    Per-tile work is VPU adds into an (acc_rows, lanes) f32 scratch; the
    cross-lane reduce + rsqrt only happen on the last tile of each batch.
    """
    t = pl.program_id(1)

    @pl.when(t == 0)
    def _():
        acc_ref[...] = jnp.zeros_like(acc_ref)

    x = x_ref[...].astype(jnp.float32)
    xsq = x * x
    tile_r, lanes = xsq.shape
    if acc_rows > 1:
        acc_ref[...] += xsq.reshape(tile_r // acc_rows, acc_rows, lanes).sum(axis=0)
    else:
        acc_ref[...] += jnp.sum(xsq, axis=0, keepdims=True)

    @pl.when(t == pl.num_programs(1) - 1)
    def _():
        ss = jnp.sum(acc_ref[...])
        inv_rms_ref[...] = jax.lax.rsqrt(ss * inv_n)[None, None]


def _normalize_kernel(x_ref, scale_ref, inv_rms_ref, o_ref):
    """Two-pass path, pass 2: out = scale * x * inv_rms[b].  Purely elementwise.

    Grid is (n_tiles, B): the scale tile index is constant across the inner
    batch loop, and inv_rms is a scalar read from SMEM (no per-step DMA).
    """
    b = pl.program_id(1)
    inv_rms = inv_rms_ref[b]
    x = x_ref[...].astype(jnp.float32)
    s = scale_ref[...].astype(jnp.float32)
    o_ref[...] = (x * s * inv_rms).astype(o_ref.dtype)


# ----------------------------- wrapper helpers ----------------------------- #

def _vmem_budget_bytes():
    """Generation-aware scoped-VMEM budget (leaves Mosaic scratch headroom)."""
    try:
        cap = int(pltpu.get_tpu_info().vmem_capacity_bytes)
    except Exception:
        cap = 0
    if cap <= 0:
        cap = 64 << 20                               # unknown: assume v7x-class
    if cap <= (64 << 20):                            # v7x: 64 MiB physical
        return max(16 << 20, min(40 << 20, cap - (16 << 20)))
    return min(96 << 20, cap - (32 << 20))           # v5e/v6e: 128 MiB physical


def _choose_lanes(n, d):
    """Largest lane width in {1024,512,256,128} dividing n, else native D."""
    for lanes in (1024, 512, 256, 128):
        if n % lanes == 0:
            return lanes
    return d


def _pick_fused_batch_block(batch, rows, lanes, x_isz, s_isz, budget):
    """Largest divisor bb of `batch` whose fused whole-slab block fits `budget`."""
    slab = rows * lanes
    for bb in range(batch, 0, -1):
        if batch % bb:
            continue
        need = (4 * bb * slab * x_isz        # double-buffered x in + out
                + 2 * slab * s_isz           # scale (constant block index)
                + 3 * bb * slab * 4          # in-body f32 temporaries
                + (1 << 20))                 # headroom
        if need <= budget:
            return bb
    return None


def _choose_row_tile(rows, row_bytes, target_bytes, quantum):
    """Row tile for the two-pass path.

    Returns (tile_r, padded_rows).  tile_r is a multiple of `quantum` (or equals
    rows); padded_rows > rows means the caller must zero-pad the rows axis so
    the VMEM bound stays independent of awkward row counts.
    """
    if rows * row_bytes <= target_bytes or rows <= quantum:
        return rows, rows
    limit = max(quantum, (target_bytes // row_bytes) // quantum * quantum)
    for t in range(int(limit), quantum - 1, -quantum):
        if rows % t == 0:
            return t, rows
    tile_r = int(limit)
    padded = ((rows + tile_r - 1) // tile_r) * tile_r
    return tile_r, padded


# ------------------------------- wrapper ----------------------------------- #

def rmsnorm(x, scale, *, vmem_budget_bytes=None, row_tile_bytes=None,
            force_two_pass=False):
    """x: (B, S, D); scale: (layer_seq, D) with layer_seq >= S."""
    B, S, D = x.shape
    n = S * D
    inv_n = 1.0 / float(n)

    scale_sliced = scale[:S, :]                    # matches scale[:x.shape[1], :]

    # Lane-dense layout: the reduction is slab-wide and the scaling elementwise,
    # so the identical (S, D) -> (rows, lanes) reshape of x / scale / out is free.
    lanes = _choose_lanes(n, D)
    rows = n // lanes

    x3 = x.reshape(B, rows, lanes)
    scale2 = scale_sliced.reshape(rows, lanes)

    x_isz = jnp.dtype(x.dtype).itemsize
    s_isz = jnp.dtype(scale.dtype).itemsize

    budget = (int(vmem_budget_bytes) if vmem_budget_bytes is not None
              else _vmem_budget_bytes())
    vmem_limit = int(max(32 << 20, budget))

    # ---- Fused single-pass path: read x once, reduce + normalize in VMEM ---- #
    bb = (None if force_two_pass
          else _pick_fused_batch_block(B, rows, lanes, x_isz, s_isz, budget))
    if bb is not None:
        out3 = pl.pallas_call(
            functools.partial(_fused_rmsnorm_kernel, inv_n=inv_n),
            out_shape=jax.ShapeDtypeStruct((B, rows, lanes), x.dtype),
            grid_spec=pltpu.PrefetchScalarGridSpec(
                num_scalar_prefetch=0,
                grid=(B // bb,),
                in_specs=[
                    pl.BlockSpec((bb, rows, lanes), lambda i: (i, 0, 0)),
                    pl.BlockSpec((rows, lanes), lambda i: (0, 0)),
                ],
                out_specs=pl.BlockSpec((bb, rows, lanes), lambda i: (i, 0, 0)),
            ),
            compiler_params=pltpu.CompilerParams(
                dimension_semantics=("parallel",),
                vmem_limit_bytes=vmem_limit,
            ),
        )(x3, scale2)
        return out3.reshape(B, S, D)

    # ---- Two-pass fallback: per-batch slab larger than the VMEM budget ---- #
    quantum = max(8, 32 // max(1, x_isz))          # 8 f32 / 16 bf16 / 32 int8-fp8
    target = (int(row_tile_bytes) if row_tile_bytes is not None
              else min(max(budget // 14, 1 << 20), 8 << 20))
    tile_r, padded_rows = _choose_row_tile(rows, lanes * x_isz, target, quantum)
    if padded_rows != rows:
        # Zero-padding keeps sum(x^2) exact; padded output rows are sliced away
        # below.  Avoids a whole-slab fallback block blowing the VMEM budget.
        x3 = jnp.pad(x3, ((0, 0), (0, padded_rows - rows), (0, 0)))
        scale2 = jnp.pad(scale2, ((0, padded_rows - rows), (0, 0)))
    n_tiles = padded_rows // tile_r
    acc_rows = 8 if tile_r % 8 == 0 else 1

    # Pass 1: per-batch inv_rms (tiled VPU accumulation, reduce on last tile).
    # TODO(synk): on v7x (2 TCs) additionally split the tile axis into
    # (parallel_chunks, arbitrary_inner) partial sums when B is small/odd.
    inv_rms = pl.pallas_call(
        functools.partial(_sumsq_kernel, inv_n=inv_n, acc_rows=acc_rows),
        out_shape=jax.ShapeDtypeStruct((B, 1, 1), jnp.float32),
        grid_spec=pltpu.PrefetchScalarGridSpec(
            num_scalar_prefetch=0,
            grid=(B, n_tiles),
            in_specs=[
                pl.BlockSpec((pl.Squeezed(), tile_r, lanes),
                             lambda b, t: (b, t, 0)),
            ],
            out_specs=pl.BlockSpec((pl.Squeezed(), 1, 1),
                                   lambda b, t: (b, 0, 0)),
            scratch_shapes=[pltpu.VMEM((acc_rows, lanes), jnp.float32)],
        ),
        compiler_params=pltpu.CompilerParams(
            dimension_semantics=("parallel", "arbitrary"),
            vmem_limit_bytes=vmem_limit,
        ),
    )(x3).reshape(B)

    # Pass 2: elementwise normalize, grid (n_tiles, B) so the scale tile is not
    # re-fetched per batch; inv_rms read as a scalar from SMEM.
    out3 = pl.pallas_call(
        _normalize_kernel,
        out_shape=jax.ShapeDtypeStruct((B, padded_rows, lanes), x.dtype),
        grid_spec=pltpu.PrefetchScalarGridSpec(
            num_scalar_prefetch=0,
            grid=(n_tiles, B),
            in_specs=[
                pl.BlockSpec((pl.Squeezed(), tile_r, lanes),
                             lambda t, b: (b, t, 0)),
                pl.BlockSpec((tile_r, lanes),
                             lambda t, b: (t, 0)),
                pl.BlockSpec(memory_space=pltpu.MemorySpace.SMEM),
            ],
            out_specs=pl.BlockSpec((pl.Squeezed(), tile_r, lanes),
                                   lambda t, b: (b, t, 0)),
        ),
        compiler_params=pltpu.CompilerParams(
            dimension_semantics=("parallel", "parallel"),
            vmem_limit_bytes=vmem_limit,
        ),
    )(x3, scale2, inv_rms)

    if padded_rows != rows:
        out3 = out3[:, :rows, :]
    return out3.reshape(B, S, D)


# ----------------------------- reference ---------------------------------- #

def rmsnorm_ref(x, scale):
    """Pure-JAX (f32) reference matching the PyTorch forward exactly."""
    B, S, D = x.shape
    xf = x.astype(jnp.float32)
    ff_rms = jnp.linalg.norm(xf.reshape(B, -1), axis=-1) * (S * D) ** (-0.5)
    raw = xf / ff_rms[:, None, None]
    return scale[:S, :][None, :, :].astype(jnp.float32) * raw


# ------------------------------- main -------------------------------------- #

if __name__ == "__main__":
    key = jax.random.PRNGKey(0)
    k1, k2, k3, k4, k5 = jax.random.split(key, 5)

    # Module config: layer_shape = (context_window, d_model) = (16, 128).
    B, CTX, D = 2, 16, 128
    scale = 1.0 + 0.1 * jax.random.normal(k1, (CTX, D), dtype=jnp.float32)

    # 1) Full context window -> fused single-pass path (single grid step).
    x_full = jax.random.normal(k2, (B, CTX, D), dtype=jnp.float32)
    out_full = jax.block_until_ready(rmsnorm(x_full, scale))
    assert out_full.shape == (B, CTX, D)
    assert jnp.allclose(out_full, rmsnorm_ref(x_full, scale),
                        atol=1e-5, rtol=1e-5), "mismatch (fused, full context)"

    # 2) Shorter sequence -> exercises the scale[:S, :] slicing.
    S = 8
    x_short = jax.random.normal(k3, (B, S, D), dtype=jnp.float32)
    out_short = jax.block_until_ready(rmsnorm(x_short, scale))
    assert out_short.shape == (B, S, D)
    assert jnp.allclose(out_short, rmsnorm_ref(x_short, scale),
                        atol=1e-5, rtol=1e-5), "mismatch (fused, short seq)"

    # 3) bf16 input through the fused path (in-kernel f32 compute + cast back).
    x_bf16 = x_full.astype(jnp.bfloat16)
    out_bf16 = jax.block_until_ready(rmsnorm(x_bf16, scale))
    assert out_bf16.dtype == jnp.bfloat16
    assert jnp.allclose(out_bf16.astype(jnp.float32), rmsnorm_ref(x_bf16, scale),
                        atol=3e-2, rtol=3e-2), "mismatch (fused, bf16)"

    # 4) Forced two-pass tiled path: multi-tile pass-1 accumulation,
    #    reordered pass-2 grid, inv_rms in SMEM.
    S2, D2 = 64, 256
    scale_b = 1.0 + 0.1 * jax.random.normal(k1, (S2, D2), dtype=jnp.float32)
    x_big = jax.random.normal(k4, (B, S2, D2), dtype=jnp.float32)
    out_big = jax.block_until_ready(
        rmsnorm(x_big, scale_b, force_two_pass=True, row_tile_bytes=8192))
    assert jnp.allclose(out_big, rmsnorm_ref(x_big, scale_b),
                        atol=1e-5, rtol=1e-5), "mismatch (two-pass)"

    # 5) Forced two-pass with a row count needing zero-padding (robust fallback
    #    for awkward shapes instead of a whole-slab block).
    S3, D3 = 36, 128
    scale_c = 1.0 + 0.1 * jax.random.normal(k1, (S3, D3), dtype=jnp.float32)
    x_pad = jax.random.normal(k5, (B, S3, D3), dtype=jnp.float32)
    out_pad = jax.block_until_ready(
        rmsnorm(x_pad, scale_c, force_two_pass=True, row_tile_bytes=2048))
    assert jnp.allclose(out_pad, rmsnorm_ref(x_pad, scale_c),
                        atol=1e-5, rtol=1e-5), "mismatch (two-pass, padded rows)"

    print("KERNEL_OK")
</pallas_src>

<mosaic_0001>
module attributes {stable_mosaic.version = 11 : i64} {
  func.func @_fused_rmsnorm_kernel(%arg0: i32, %arg1: memref<2x2x1024xf32, #tpu.memory_space<vmem>>, %arg2: memref<2x1024xf32, #tpu.memory_space<vmem>>, %arg3: memref<2x2x1024xf32, #tpu.memory_space<vmem>>) attributes {dimension_semantics = [#tpu.dimension_semantics<parallel>], iteration_bounds = array<i64: 1>, scalar_prefetch = 0 : i64, scratch_operands = 0 : i64, tpu.core_type = #tpu.core_type<tc>, window_params = [{transform_indices = @transform_0, window_bounds = array<i64: 2, 2, 1024>}, {pipeline_mode = #tpu.pipeline_mode<synchronous>, transform_indices = @transform_1, window_bounds = array<i64: 2, 1024>}, {transform_indices = @transform_2, window_bounds = array<i64: 2, 2, 1024>}]} {
    %c0 = arith.constant 0 : index
    %c0_0 = arith.constant 0 : index
    %c0_1 = arith.constant 0 : index
    %0 = vector.load %arg1[%c0, %c0_0, %c0_1] : memref<2x2x1024xf32, #tpu.memory_space<vmem>>, vector<2x2x1024xf32>
    %1 = arith.mulf %0, %0 : vector<2x2x1024xf32>
    %cst = arith.constant dense<0.000000e+00> : vector<2x2xf32>
    %2 = vector.multi_reduction <add>, %1, %cst [2] : vector<2x2x1024xf32> to vector<2x2xf32>
    %3 = vector.shape_cast %2 : vector<2x2xf32> to vector<2x2x1xf32>
    %cst_2 = arith.constant dense<0.000000e+00> : vector<2x1xf32>
    %4 = vector.multi_reduction <add>, %3, %cst_2 [1] : vector<2x2x1xf32> to vector<2x1xf32>
    %5 = vector.shape_cast %4 : vector<2x1xf32> to vector<2x1x1xf32>
    %cst_3 = arith.constant 4.8828125E-4 : f32
    %6 = vector.broadcast %cst_3 : f32 to vector<2x1x1xf32>
    %7 = arith.mulf %5, %6 : vector<2x1x1xf32>
    %8 = math.rsqrt %7 : vector<2x1x1xf32>
    %c0_4 = arith.constant 0 : index
    %c0_5 = arith.constant 0 : index
    %9 = vector.load %arg2[%c0_4, %c0_5] : memref<2x1024xf32, #tpu.memory_space<vmem>>, vector<2x1024xf32>
    %10 = vector.shape_cast %9 : vector<2x1024xf32> to vector<1x2x1024xf32>
    %11 = vector.broadcast %10 : vector<1x2x1024xf32> to vector<2x2x1024xf32>
    %12 = arith.mulf %0, %11 : vector<2x2x1024xf32>
    %13 = vector.broadcast %8 : vector<2x1x1xf32> to vector<2x2x1024xf32>
    %14 = arith.mulf %12, %13 : vector<2x2x1024xf32>
    %c0_6 = arith.constant 0 : index
    %c0_7 = arith.constant 0 : index
    %c0_8 = arith.constant 0 : index
    %15 = vector.load %arg3[%c0_6, %c0_7, %c0_8] : memref<2x2x1024xf32, #tpu.memory_space<vmem>>, vector<2x2x1024xf32>
    tpu.vector_store %arg3[%c0_6, %c0_7, %c0_8], %14 {strides = array<i32>} : memref<2x2x1024xf32, #tpu.memory_space<vmem>>, vector<2x2x1024xf32>,
    return
  }
  func.func @transform_0(%arg0: i32) -> (i32, i32, i32) {
    %c0_i32 = arith.constant 0 : i32
    %c0_i32_0 = arith.constant 0 : i32
    %c0_i32_1 = arith.constant 0 : i32
    return %arg0, %c0_i32, %c0_i32_0 : i32, i32, i32
  }
  func.func @transform_1(%arg0: i32) -> (i32, i32) {
    %c0_i32 = arith.constant 0 : i32
    %c0_i32_0 = arith.constant 0 : i32
    %c0_i32_1 = arith.constant 0 : i32
    return %c0_i32, %c0_i32_0 : i32, i32
  }
  func.func @transform_2(%arg0: i32) -> (i32, i32, i32) {
    %c0_i32 = arith.constant 0 : i32
    %c0_i32_0 = arith.constant 0 : i32
    %c0_i32_1 = arith.constant 0 : i32
    return %arg0, %c0_i32, %c0_i32_0 : i32, i32, i32
  }
}

</mosaic_0001>

<bundles_post_ra>
// kernel: tpu_custom_call.1
= control target key start
LH: loop header
LB: loop body
LE: loop exit
PB: predicated region body
PF: predicated region fallthrough
CT: control target
= control target key end

     0   :  { %7 = vsyncpa [#allocation3], 0  ;;  %s402_s0 = inlined_call_operand.hbm [shape: f32[2,2,1024], index: 0, kind: input, shape index: {}]   ;;  %s403_s1 = inlined_call_operand.hbm [shape: f32[2,1024], index: 1, kind: input, shape index: {}]   ;;  %s404_s2 = inlined_call_operand.hbm [shape: f32[2,2,1024], index: 2, kind: output, shape index: {}]  }
   0x1   :  { %8 = vsyncpa [#allocation6], 0 }
   0x2   :  { %9 = vsyncpa [#allocation4], 0  ;;  %s301_s9 = smov [#allocation2]   ;;  %s229_s13 = scalar_lea.hbm %s402_s0, 512 }
   0x3   :  { %s15_s10 = sshll.u32 %s301_s9, 4  ;;  %p230_p0 = scmp.ne.s32.totalorder %s402_s0, %s229_s13  ;;  %s16_s10 = int_to_ptr.vmem [resolvable:$true] %s15_s10 }
   0x4   :  { %p233_p1 = scmp.lt.u32.totalorder %s229_s13, %s402_s0 }
   0x6   :  { %p235_p2 = pnand %p233_p1, %p230_p0 }
   0x8   :  { %238 = shalt.err (!%p235_p2)
}
   0x9   :  { %s239_s18 = scalar_lea.vmem %s16_s10, 512  ;;  %p244_p4 = scmp.lt.s32.totalorder %s16_s10, %s16_s10 }
   0xa   :  { %p240_p3 = scmp.ne.s32.totalorder %s16_s10, %s239_s18  ;;  %p245_p5 = scmp.lt.s32.totalorder %s239_s18, %s239_s18 }
   0xc   :  { %p246_p6 = por %p245_p5, %p244_p4 }
   0xe   :  { %p247_p7 = pnand %p246_p6, %p240_p3 }
  0x10   :  { %250 = shalt.err (!%p247_p7)
}
  0x11   :  { %s302_s19 = smov 256   ;;  %s303_s20 = smov 16  }
  0x12   :  { %21 = dma.hbm_to_vmem [thread:$0]  %s402_s0, 512, %s16_s10, [#allocation3], %s302_s19, %s302_s19, %s303_s20  }
  0x13   :  { %s304_s23 = smov [#allocation5]   ;;  %s251_s27 = scalar_lea.hbm %s403_s1, 256 }
  0x14   :  { %s28_s24 = sshll.u32 %s304_s23, 4  ;;  %p252_p8 = scmp.ne.s32.totalorder %s403_s1, %s251_s27  ;;  %s29_s24 = int_to_ptr.vmem [resolvable:$true] %s28_s24 }
  0x15   :  { %p255_p9 = scmp.lt.u32.totalorder %s251_s27, %s403_s1 }
  0x17   :  { %p257_p10 = pnand %p255_p9, %p252_p8 }
  0x19   :  { %260 = shalt.err (!%p257_p10)
}
  0x1a   :  { %s261_s4 = scalar_lea.vmem %s29_s24, 256  ;;  %p266_p12 = scmp.lt.s32.totalorder %s29_s24, %s29_s24 }
  0x1b   :  { %p262_p11 = scmp.ne.s32.totalorder %s29_s24, %s261_s4  ;;  %p267_p13 = scmp.lt.s32.totalorder %s261_s4, %s261_s4 }
  0x1d   :  { %p268_p0 = por %p267_p13, %p266_p12 }
  0x1f   :  { %p269_p1 = pnand %p268_p0, %p262_p11 }
  0x21   :  { %272 = shalt.err (!%p269_p1)
}
  0x22   :  { %31 = dma.hbm_to_vmem [thread:$0]  %s403_s1, 256, %s29_s24, [#allocation6]  }
  0x23   :  { %295 = dma.done.wait [#allocation3], 512  }
  0x24   :  { %296 = vsyncadd [#allocation3], 4294966784 }
  0x25   :  { %297 = dma.done.wait [#allocation6], 256  }
  0x26   :  { %298 = vsyncadd [#allocation6], 4294967040  ;;  %v54_v0 = vlaneseq  ;;  %v305_v1 = vmov 1983009808   ;;  %v349_v6 = vld [vmem:[#allocation2] sm:$0xff]  ;;  %v351_v7 = vld [vmem:[#allocation2 + $0x8] sm:$0xff] }
  0x27   :  { %v52_v2 = vunpack.c.l.s4 %v305_v1  ;;  %v42_v8 = vmul.f32 %v349_v6, %v349_v6  ;;  %v43_v9 = vmul.f32 %v351_v7, %v351_v7  ;;  %v357_v10 = vld [vmem:[#allocation2 + $0x10] sm:$0xff]  ;;  %v359_v11 = vld [vmem:[#allocation2 + $0x18] sm:$0xff]  ;;  %vm134_vm0 = vcmask 1041408   ;;  %s306_s1 = smov [#allocation7]  }
  0x28   :  { %v55_v3 = vshrl.u32 %v54_v0, 7  ;;  %v44_v12 = vmul.f32 %v357_v10, %v357_v10  ;;  %v45_v15 = vmul.f32 %v359_v11, %v359_v11  ;;  %s206_s6 = sshll.u32 %s306_s1, 4  ;;  %s207_s6 = int_to_ptr.vmem [resolvable:$true] %s206_s6 }
  0x29   :  { %v53_v4 = vunpack.c.0.s8 %v52_v2  ;;  %v50_v13 = vcombine.high %v42_v8, %v42_v8  ;;  %v67_v20 = vcombine.high %v43_v9, %v43_v9  ;;  %s273_s7 = scalar_lea.vmem %s207_s6, 512  ;;  %p278_p3 = scmp.lt.s32.totalorder %s207_s6, %s207_s6 }
  0x2a   :  { %v84_v16 = vcombine.high %v44_v12, %v44_v12  ;;  %v101_v30 = vcombine.high %v45_v15, %v45_v15  ;;  %p274_p2 = scmp.ne.s32.totalorder %s207_s6, %s273_s7  ;;  %p279_p4 = scmp.lt.s32.totalorder %s273_s7, %s273_s7 }
  0x2b   :  { %v56_v5 = vsub.s32 %v53_v4, %v55_v3 }
  0x2c   :  { %p280_p5 = por %p279_p4, %p278_p3 }
  0x2d   :  { %v57_v14 = vrot.slane %v42_v8, %v56_v5  ;;  %v91_v17 = vrot.slane %v44_v12, %v56_v5  ;;  %v64_v18 = vrot.slane %v50_v13, %v56_v5  ;;  %v74_v21 = vrot.slane %v43_v9, %v56_v5 }
  0x2e   :  { %v98_v23 = vrot.slane %v84_v16, %v56_v5  ;;  %v108_v31 = vrot.slane %v45_v15, %v56_v5  ;;  %v81_v32 = vrot.slane %v67_v20, %v56_v5  ;;  %v115_v42 = vrot.slane %v101_v30, %v56_v5  ;;  %p281_p6 = pnand %p280_p5, %p274_p2 }
  0x2f   :  { %v65_v19 = vcombine.high %v57_v14, %v57_v14  ;;  %v135_v22 = vsel %vm134_vm0, %v57_v14, 0.0  ;;  %v99_v24 = vcombine.high %v91_v17, %v91_v17  ;;  %v66_v25 = vcombine.high %v64_v18, %v64_v18 }
  0x30   :  { %v138_v27 = vsel %vm134_vm0, %v64_v18, 0.0  ;;  %v100_v29 = vcombine.high %v98_v23, %v98_v23  ;;  %v82_v33 = vcombine.high %v74_v21, %v74_v21  ;;  %v152_v36 = vsel %vm134_vm0, %v91_v17, 0.0 }
  0x31   :  { %v136_v26 = vsel %vm134_vm0, %v65_v19, 0.0  ;;  %v140_v34 = vsel %vm134_vm0, %v66_v25, 0.0  ;;  %v153_v37 = vsel %vm134_vm0, %v99_v24, 0.0  ;;  %v155_v38 = vsel %vm134_vm0, %v98_v23, 0.0  ;;  %v187_v23 = vld [vmem:[#allocation5] sm:$0xff] }
  0x32   :  { %v137_v28 = vadd.f32 %v136_v26, %v135_v22  ;;  %v142_v39 = vsel %vm134_vm0, %v74_v21, 0.0  ;;  %v154_v40 = vadd.f32 %v153_v37, %v152_v36  ;;  %v116_v43 = vcombine.high %v108_v31, %v108_v31  ;;  %v188_v22 = vld [vmem:[#allocation5 + $0x8] sm:$0xff] }
  0x33   :  { %v157_v44 = vsel %vm134_vm0, %v100_v29, 0.0  ;;  %v83_v45 = vcombine.high %v81_v32, %v81_v32  ;;  %v144_v46 = vsel %vm134_vm0, %v82_v33, 0.0  ;;  %v159_v49 = vsel %vm134_vm0, %v108_v31, 0.0 }
  0x34   :  { %v139_v35 = vadd.f32 %v138_v27, %v137_v28  ;;  %v156_v47 = vadd.f32 %v155_v38, %v154_v40  ;;  %v146_v50 = vsel %vm134_vm0, %v81_v32, 0.0  ;;  %v117_v53 = vcombine.high %v115_v42, %v115_v42 }
  0x35   :  { %v161_v54 = vsel %vm134_vm0, %v116_v43, 0.0  ;;  %v148_v55 = vsel %vm134_vm0, %v83_v45, 0.0  ;;  %v163_v58 = vsel %vm134_vm0, %v115_v42, 0.0  ;;  %v190_v24 = vmul.f32 %v188_v22, %v351_v7 }
  0x36   :  { %v141_v41 = vadd.f32 %v140_v34, %v139_v35  ;;  %v158_v51 = vadd.f32 %v157_v44, %v156_v47  ;;  %v165_v61 = vsel %vm134_vm0, %v117_v53, 0.0  ;;  %v189_v25 = vmul.f32 %v187_v23, %v349_v6 }
  0x37   :  { %v191_v27 = vmul.f32 %v187_v23, %v357_v10  ;;  %v192_v28 = vmul.f32 %v188_v22, %v359_v11 }
  0x38   :  { %v143_v48 = vadd.f32 %v142_v39, %v141_v41  ;;  %v160_v56 = vadd.f32 %v159_v49, %v158_v51 }
  0x3a   :  { %v145_v52 = vadd.f32 %v144_v46, %v143_v48  ;;  %v162_v59 = vadd.f32 %v161_v54, %v160_v56 }
  0x3c   :  { %v147_v57 = vadd.f32 %v146_v50, %v145_v52  ;;  %v164_v62 = vadd.f32 %v163_v58, %v162_v59 }
  0x3e   :  { %v149_v60 = vadd.f32 %v148_v55, %v147_v57  ;;  %v166_v63 = vadd.f32 %v165_v61, %v164_v62 }
  0x40   :  { %150 = vadd.xlane.f32.xlu0 %v149_v60 }
  0x44   :  { %167 = vadd.xlane.f32.xlu0 %v166_v63 }
  0xcd   :  { %v151_v0 = vpop.xlane.xlu0 %150 }
  0xce   :  { %v169_v1 = vsel %vm134_vm0, %v151_v0, 0.0 }
  0xcf   :  { %v170_v2 = vrot.slane %v169_v1, 4 }
  0xd1   :  { %v171_v3 = vadd.f32 %v170_v2, %v169_v1  ;;  %v168_v4 = vpop.xlane.xlu0 %167 }
  0xd2   :  { %v176_v5 = vsel %vm134_vm0, %v168_v4, 0.0 }
  0xd3   :  { %v172_v8 = vrot.slane %v171_v3, 2  ;;  %v177_v9 = vrot.slane %v176_v5, 4 }
  0xd5   :  { %v173_v12 = vadd.f32 %v172_v8, %v171_v3  ;;  %v178_v13 = vadd.f32 %v177_v9, %v176_v5 }
  0xd7   :  { %v174_v14 = vrot.slane %v173_v12, 1  ;;  %v179_v15 = vrot.slane %v178_v13, 2 }
  0xd9   :  { %v175_v16 = vadd.f32 %v174_v14, %v173_v12  ;;  %v180_v17 = vadd.f32 %v179_v15, %v178_v13 }
  0xdb   :  { %v183_v18 = vmul.f32 0.00048828125, %v175_v16  ;;  %v181_v19 = vrot.slane %v180_v17, 1 }
  0xdd   :  { %225 = vrsqrt.f32 %v183_v18  ;;  %v182_v20 = vadd.f32 %v181_v19, %v180_v17 }
  0xdf   :  { %v184_v21 = vmul.f32 0.00048828125, %v182_v20 }
  0xe1   :  { %227 = vrsqrt.f32 %v184_v21 }
  0xe7   :  { %v226_v26 = vpop.eup %225 }
  0xe8   :  { %v193_v29 = vmul.f32 %v226_v26, %v189_v25  ;;  %v194_v30 = vmul.f32 %v226_v26, %v190_v24 }
  0xea   :  { %197 = vst [vmem:[#allocation7] sm:$0xff] %v193_v29  ;;  %198 = vst [vmem:[#allocation7 + $0x8] sm:$0xff] %v194_v30 }
  0xeb   :  { %v228_v31 = vpop.eup %227 }
  0xec   :  { %v195_v32 = vmul.f32 %v228_v31, %v191_v27  ;;  %v196_v33 = vmul.f32 %v228_v31, %v192_v28 }
  0xee   :  { %199 = vst [vmem:[#allocation7 + $0x10] sm:$0xff] %v195_v32  ;;  %200 = vst [vmem:[#allocation7 + $0x18] sm:$0xff] %v196_v33 }
  0xef   :  { %284 = shalt.err (!%p281_p6)
}
  0xf0   :  { %s285_s10 = scalar_lea.hbm %s404_s2, 512 }
  0xf1   :  { %p286_p7 = scmp.ne.s32.totalorder %s404_s2, %s285_s10  ;;  %p289_p8 = scmp.lt.u32.totalorder %s285_s10, %s404_s2 }
  0xf3   :  { %p291_p9 = pnand %p289_p8, %p286_p7 }
  0xf5   :  { %294 = shalt.err (!%p291_p9)
}
  0xf6   :  { %212 = dma.vmem_to_hbm [thread:$0]  %s207_s6, 512, %s404_s2, [#allocation4], %s302_s19, %s302_s19, %s303_s20  }
  0xf7   :  { %299 = dma.done.wait [#allocation4], 512  }
  0xf8   :  { %300 = vsyncadd [#allocation4], 4294966784 }
  0xf9   :  { %216 = vsyncpa [#allocation3], 1 }
  0xfa   :  { %217 = vsyncpa [#allocation6], 1 }
  0xfb   :  { %218 = vsyncpa [#allocation4], 1 }

</bundles_post_ra>
